<compile_context>
chip_gen: v5e
topology: v5e:2x2
jax: 0.10.0
libtpu: 0.0.40
codegen_flags: <defaults>
</compile_context>

<pallas_src>
import functools

import jax
import jax.numpy as jnp
from jax.experimental import pallas as pl
from jax.experimental.pallas import tpu as pltpu

MIN_NORM = 1e-15
ARTANH_EPS = 1e-7   # effective in float32 (1 - 1e-7 < 1); 1e-15 would be a no-op


def _hdecoder_kernel(sc_ref, x_ref, o_ref, *, seg_d, num_seg):
    """One (tile_rows, Dp) block of logmap0 with a per-segment (per original row) norm.

    sc_ref : SMEM (1,) scalar prefetch holding sqrt(curvature)
    x_ref  : VMEM (tile_rows, Dp) packed hyperbolic features
    o_ref  : VMEM (tile_rows, Dp) packed euclidean output
    seg_d  : original feature dim D (lanes per packed segment)
    num_seg: original rows packed per lane-row (Dp == num_seg * seg_d)
    """
    sqrt_c = sc_ref[0]
    x = x_ref[...].astype(jnp.float32)   # keep f32 math even for bf16 inputs
    x2 = x * x

    if num_seg == 1:
        sumsq = jnp.sum(x2, axis=-1, keepdims=True)               # (tile, 1)
    else:
        # Segmented sum of squares over groups of seg_d lanes, broadcast back per lane.
        lane = jax.lax.broadcasted_iota(jnp.int32, x.shape, 1)
        sumsq = jnp.zeros_like(x2)
        for s in range(num_seg):                                  # unrolled, num_seg <= 16
            in_seg = (lane >= s * seg_d) & (lane < (s + 1) * seg_d)
            ssum = jnp.sum(jnp.where(in_seg, x2, 0.0), axis=-1, keepdims=True)
            sumsq = jnp.where(in_seg, ssum, sumsq)                # (tile, Dp)

    norm = jnp.maximum(jnp.sqrt(sumsq), MIN_NORM)
    z = jnp.clip(sqrt_c * norm, -1.0 + ARTANH_EPS, 1.0 - ARTANH_EPS)
    artanh_z = 0.5 * (jnp.log1p(z) - jnp.log1p(-z))
    scale = artanh_z / (sqrt_c * norm)                            # broadcasts over lanes
    o_ref[...] = (scale * x).astype(o_ref.dtype)


def _cdiv(a, b):
    return -(-a // b)


def _round_up(a, b):
    return _cdiv(a, b) * b


def hyperbolic_decoder(x, curvature, *, target_block_bytes=4 * 1024 * 1024):
    """Projects x (N, D) from the PoincareBall with curvature c back into euclidean space."""
    N, D = x.shape
    dtype_bytes = jnp.dtype(x.dtype).itemsize

    c = jnp.asarray(curvature, dtype=jnp.float32).reshape(-1)[0]
    sqrt_c = jnp.sqrt(c).reshape((1,))           # -> SMEM via scalar prefetch

    # Lane-dense packing: if D < 128 and divides 128, pack g rows per 128-lane row so
    # every load/store uses all lanes instead of D/128 of them (masked vst otherwise).
    pack = (D < 128) and (128 % D == 0) and (D >= 8)
    g = (128 // D) if pack else 1
    Dp = g * D

    rows = _cdiv(N, g)                           # packed rows
    # Row tile sized for ~target_block_bytes per block (amortizes per-step overhead);
    # a single block for small inputs (no divisibility requirement on N).
    tile_cap = max(8, (target_block_bytes // (Dp * dtype_bytes)) // 8 * 8)
    tile_rows = _round_up(rows, 8) if rows <= tile_cap else tile_cap
    rows_padded = _round_up(rows, tile_rows)
    n_padded = rows_padded * g

    x_in = x if n_padded == N else jnp.pad(x, ((0, n_padded - N), (0, 0)))
    x_in = x_in.reshape(rows_padded, Dp)         # row-major: g original rows per packed row

    grid = (rows_padded // tile_rows,)
    block_bytes = tile_rows * Dp * dtype_bytes
    # in + out, double-buffered, plus slack for f32 temporaries; kept well under v7x's
    # 64 MiB physical VMEM and raised above v5e's 16 MiB scoped default.
    vmem_limit = int(min(max(4 * block_bytes + (8 << 20), 16 << 20), 48 << 20))

    kernel = functools.partial(_hdecoder_kernel, seg_d=D, num_seg=g)

    grid_spec = pltpu.PrefetchScalarGridSpec(
        num_scalar_prefetch=1,                   # sqrt(c) -> SMEM
        grid=grid,
        in_specs=[pl.BlockSpec((tile_rows, Dp), lambda i, sc: (i, 0))],
        out_specs=pl.BlockSpec((tile_rows, Dp), lambda i, sc: (i, 0)),
    )

    out_packed = pl.pallas_call(
        kernel,
        out_shape=jax.ShapeDtypeStruct((rows_padded, Dp), x.dtype),
        grid_spec=grid_spec,
        compiler_params=pltpu.CompilerParams(
            dimension_semantics=("parallel",),   # lets v7x shard the row axis over 2 TCs
            vmem_limit_bytes=vmem_limit,
        ),
    )(sqrt_c, x_in)

    out = out_packed.reshape(n_padded, D)
    return out if n_padded == N else out[:N]


def hyperbolic_decoder_ref(x, curvature):
    """Pure-JAX reference (mirrors PoincareBall.logmap0)."""
    c = jnp.asarray(curvature, dtype=jnp.float32).reshape(-1)[0]
    sqrt_c = jnp.sqrt(c)
    xf = x.astype(jnp.float32)
    norm = jnp.maximum(jnp.linalg.norm(xf, axis=-1, keepdims=True), MIN_NORM)
    z = jnp.clip(sqrt_c * norm, -1.0 + ARTANH_EPS, 1.0 - ARTANH_EPS)
    artanh_z = 0.5 * (jnp.log1p(z) - jnp.log1p(-z))
    return ((artanh_z / (sqrt_c * norm)) * xf).astype(x.dtype)


# TODO(synk): the Hyperboloid-manifold branch (dropping the first coordinate) is not
# implemented; the module defaults to the PoincareBall manifold, which is what this covers.

if __name__ == "__main__":
    key = jax.random.PRNGKey(0)
    k1, k2, k3, k4 = jax.random.split(key, 4)

    # curvature parameter, matching nn.Parameter(torch.Tensor([1.0]))
    curvature = jnp.array([1.0], dtype=jnp.float32)

    # --- check 1: packed lane-dense path (D=32 < 128), ragged N (not tile-aligned) ---
    N, D = 250, 32
    v = jax.random.normal(k1, (N, D), dtype=jnp.float32)
    r = jax.random.uniform(k2, (N, 1), minval=0.05, maxval=0.9)
    # points strictly inside the unit Poincare ball (norm < 1)
    x = v / jnp.linalg.norm(v, axis=-1, keepdims=True) * r

    out = jax.block_until_ready(hyperbolic_decoder(x, curvature))
    ref = hyperbolic_decoder_ref(x, curvature)
    assert out.shape == x.shape and out.dtype == x.dtype
    assert bool(jnp.all(jnp.isfinite(out))), "non-finite output"
    assert jnp.allclose(out, ref, atol=1e-5, rtol=1e-5), "mismatch vs reference (packed path)"

    # --- check 2: already lane-dense path (D=128), row-wise reduction ---
    N2, D2 = 96, 128
    v2 = jax.random.normal(k3, (N2, D2), dtype=jnp.float32)
    r2 = jax.random.uniform(k4, (N2, 1), minval=0.05, maxval=0.9)
    x2 = v2 / jnp.linalg.norm(v2, axis=-1, keepdims=True) * r2

    out2 = jax.block_until_ready(hyperbolic_decoder(x2, curvature))
    ref2 = hyperbolic_decoder_ref(x2, curvature)
    assert jnp.allclose(out2, ref2, atol=1e-5, rtol=1e-5), "mismatch vs reference (rowwise path)"

    print("KERNEL_OK")
</pallas_src>

<mosaic_0001>
module attributes {stable_mosaic.version = 11 : i64} {
  func.func @_hdecoder_kernel(%arg0: i32, %arg1: memref<1xf32, #tpu.memory_space<smem>>, %arg2: memref<64x128xf32, #tpu.memory_space<vmem>>, %arg3: memref<64x128xf32, #tpu.memory_space<vmem>>) attributes {dimension_semantics = [#tpu.dimension_semantics<parallel>], iteration_bounds = array<i64: 1>, scalar_prefetch = 1 : i64, scratch_operands = 0 : i64, tpu.core_type = #tpu.core_type<tc>, window_params = [{transform_indices = @transform_0, window_bounds = array<i64: 64, 128>}, {transform_indices = @transform_1, window_bounds = array<i64: 64, 128>}]} {
    %c0 = arith.constant 0 : index
    %0 = memref.load %arg1[%c0] : memref<1xf32, #tpu.memory_space<smem>>
    %c0_0 = arith.constant 0 : index
    %c0_1 = arith.constant 0 : index
    %1 = vector.load %arg2[%c0_0, %c0_1] : memref<64x128xf32, #tpu.memory_space<vmem>>, vector<64x128xf32>
    %2 = arith.mulf %1, %1 : vector<64x128xf32>
    %3 = tpu.iota {dimensions = array<i32: 1>} : vector<64x128xi32>
    %cst = arith.constant 0.000000e+00 : f32
    %4 = vector.broadcast %cst : f32 to vector<64x128xf32>
    %c0_i32 = arith.constant 0 : i32
    %5 = vector.broadcast %c0_i32 : i32 to vector<64x128xi32>
    %6 = arith.cmpi sge, %3, %5 : vector<64x128xi32>
    %c32_i32 = arith.constant 32 : i32
    %7 = vector.broadcast %c32_i32 : i32 to vector<64x128xi32>
    %8 = arith.cmpi slt, %3, %7 : vector<64x128xi32>
    %9 = arith.andi %6, %8 : vector<64x128xi1>
    %cst_2 = arith.constant 0.000000e+00 : f32
    %10 = vector.broadcast %cst_2 : f32 to vector<64x128xf32>
    %11 = arith.select %9, %2, %10 : vector<64x128xi1>, vector<64x128xf32>
    %cst_3 = arith.constant dense<0.000000e+00> : vector<64xf32>
    %12 = vector.multi_reduction <add>, %11, %cst_3 [1] : vector<64x128xf32> to vector<64xf32>
    %13 = vector.shape_cast %12 : vector<64xf32> to vector<64x1xf32>
    %14 = vector.shape_cast %13 : vector<64x1xf32> to vector<64x1xf32>
    %15 = vector.broadcast %14 : vector<64x1xf32> to vector<64x128xf32>
    %16 = arith.select %9, %15, %4 : vector<64x128xi1>, vector<64x128xf32>
    %c32_i32_4 = arith.constant 32 : i32
    %17 = vector.broadcast %c32_i32_4 : i32 to vector<64x128xi32>
    %18 = arith.cmpi sge, %3, %17 : vector<64x128xi32>
    %c64_i32 = arith.constant 64 : i32
    %19 = vector.broadcast %c64_i32 : i32 to vector<64x128xi32>
    %20 = arith.cmpi slt, %3, %19 : vector<64x128xi32>
    %21 = arith.andi %18, %20 : vector<64x128xi1>
    %cst_5 = arith.constant 0.000000e+00 : f32
    %22 = vector.broadcast %cst_5 : f32 to vector<64x128xf32>
    %23 = arith.select %21, %2, %22 : vector<64x128xi1>, vector<64x128xf32>
    %cst_6 = arith.constant dense<0.000000e+00> : vector<64xf32>
    %24 = vector.multi_reduction <add>, %23, %cst_6 [1] : vector<64x128xf32> to vector<64xf32>
    %25 = vector.shape_cast %24 : vector<64xf32> to vector<64x1xf32>
    %26 = vector.shape_cast %25 : vector<64x1xf32> to vector<64x1xf32>
    %27 = vector.broadcast %26 : vector<64x1xf32> to vector<64x128xf32>
    %28 = arith.select %21, %27, %16 : vector<64x128xi1>, vector<64x128xf32>
    %c64_i32_7 = arith.constant 64 : i32
    %29 = vector.broadcast %c64_i32_7 : i32 to vector<64x128xi32>
    %30 = arith.cmpi sge, %3, %29 : vector<64x128xi32>
    %c96_i32 = arith.constant 96 : i32
    %31 = vector.broadcast %c96_i32 : i32 to vector<64x128xi32>
    %32 = arith.cmpi slt, %3, %31 : vector<64x128xi32>
    %33 = arith.andi %30, %32 : vector<64x128xi1>
    %cst_8 = arith.constant 0.000000e+00 : f32
    %34 = vector.broadcast %cst_8 : f32 to vector<64x128xf32>
    %35 = arith.select %33, %2, %34 : vector<64x128xi1>, vector<64x128xf32>
    %cst_9 = arith.constant dense<0.000000e+00> : vector<64xf32>
    %36 = vector.multi_reduction <add>, %35, %cst_9 [1] : vector<64x128xf32> to vector<64xf32>
    %37 = vector.shape_cast %36 : vector<64xf32> to vector<64x1xf32>
    %38 = vector.shape_cast %37 : vector<64x1xf32> to vector<64x1xf32>
    %39 = vector.broadcast %38 : vector<64x1xf32> to vector<64x128xf32>
    %40 = arith.select %33, %39, %28 : vector<64x128xi1>, vector<64x128xf32>
    %c96_i32_10 = arith.constant 96 : i32
    %41 = vector.broadcast %c96_i32_10 : i32 to vector<64x128xi32>
    %42 = arith.cmpi sge, %3, %41 : vector<64x128xi32>
    %c128_i32 = arith.constant 128 : i32
    %43 = vector.broadcast %c128_i32 : i32 to vector<64x128xi32>
    %44 = arith.cmpi slt, %3, %43 : vector<64x128xi32>
    %45 = arith.andi %42, %44 : vector<64x128xi1>
    %cst_11 = arith.constant 0.000000e+00 : f32
    %46 = vector.broadcast %cst_11 : f32 to vector<64x128xf32>
    %47 = arith.select %45, %2, %46 : vector<64x128xi1>, vector<64x128xf32>
    %cst_12 = arith.constant dense<0.000000e+00> : vector<64xf32>
    %48 = vector.multi_reduction <add>, %47, %cst_12 [1] : vector<64x128xf32> to vector<64xf32>
    %49 = vector.shape_cast %48 : vector<64xf32> to vector<64x1xf32>
    %50 = vector.shape_cast %49 : vector<64x1xf32> to vector<64x1xf32>
    %51 = vector.broadcast %50 : vector<64x1xf32> to vector<64x128xf32>
    %52 = arith.select %45, %51, %40 : vector<64x128xi1>, vector<64x128xf32>
    %53 = math.sqrt %52 : vector<64x128xf32>
    %cst_13 = arith.constant 1.000000e-15 : f32
    %54 = vector.broadcast %cst_13 : f32 to vector<64x128xf32>
    %55 = arith.maximumf %53, %54 : vector<64x128xf32>
    %56 = vector.broadcast %0 : f32 to vector<64x128xf32>
    %57 = arith.mulf %56, %55 : vector<64x128xf32>
    %cst_14 = arith.constant -0.99999988 : f32
    %cst_15 = arith.constant 0.99999988 : f32
    %58 = vector.broadcast %cst_14 : f32 to vector<64x128xf32>
    %59 = arith.maximumf %58, %57 : vector<64x128xf32>
    %60 = vector.broadcast %cst_15 : f32 to vector<64x128xf32>
    %61 = arith.minimumf %60, %59 : vector<64x128xf32>
    %62 = math.log1p %61 : vector<64x128xf32>
    %cst_16 = arith.constant 0.000000e+00 : f32
    %63 = vector.broadcast %cst_16 : f32 to vector<64x128xf32>
    %64 = arith.subf %63, %61 : vector<64x128xf32>
    %65 = math.log1p %64 : vector<64x128xf32>
    %66 = arith.subf %62, %65 : vector<64x128xf32>
    %cst_17 = arith.constant 5.000000e-01 : f32
    %67 = vector.broadcast %cst_17 : f32 to vector<64x128xf32>
    %68 = arith.mulf %67, %66 : vector<64x128xf32>
    %69 = vector.broadcast %0 : f32 to vector<64x128xf32>
    %70 = arith.mulf %69, %55 : vector<64x128xf32>
    %71 = arith.divf %68, %70 : vector<64x128xf32>
    %72 = arith.mulf %71, %1 : vector<64x128xf32>
    %c0_18 = arith.constant 0 : index
    %c0_19 = arith.constant 0 : index
    %73 = vector.load %arg3[%c0_18, %c0_19] : memref<64x128xf32, #tpu.memory_space<vmem>>, vector<64x128xf32>
    tpu.vector_store %arg3[%c0_18, %c0_19], %72 {strides = array<i32>} : memref<64x128xf32, #tpu.memory_space<vmem>>, vector<64x128xf32>,
    return
  }
  func.func @transform_0(%arg0: i32, %arg1: memref<1xf32, #tpu.memory_space<smem>>) -> (i32, i32) {
    %c0_i32 = arith.constant 0 : i32
    %c0_i32_0 = arith.constant 0 : i32
    return %arg0, %c0_i32 : i32, i32
  }
  func.func @transform_1(%arg0: i32, %arg1: memref<1xf32, #tpu.memory_space<smem>>) -> (i32, i32) {
    %c0_i32 = arith.constant 0 : i32
    %c0_i32_0 = arith.constant 0 : i32
    return %arg0, %c0_i32 : i32, i32
  }
}

</mosaic_0001>

<bundles_post_ra>
// kernel: tpu_custom_call.1
= control target key start
LH: loop header
LB: loop body
LE: loop exit
PB: predicated region body
PF: predicated region fallthrough
CT: control target
= control target key end

     0   :  { %8 = vsyncpa [#allocation5], 0  ;;  %s1601_s0 = inlined_call_operand.<no memory space> [shape: f32[1], index: 0, kind: input, shape index: {}]   ;;  %s1602_s1 = inlined_call_operand.hbm [shape: f32[64,128], index: 1, kind: input, shape index: {}]   ;;  %s1603_s2 = inlined_call_operand.hbm [shape: f32[64,128], index: 2, kind: output, shape index: {}]  }
   0x1   :  { %9 = vsyncpa [#allocation6], 0  ;;  %s14_s11 = sshll.u32 %s1602_s1, 4  ;;  %s774_s12 = smov [#allocation4]   ;;  %s15_s11 = int_to_ptr.hbm [resolvable:$true] %s14_s11 }
   0x2   :  { %s16_s13 = sshll.u32 %s774_s12, 4  ;;  %s775_s14 = smov 128   ;;  %s17_s13 = int_to_ptr.vmem [resolvable:$true] %s16_s13 }
   0x3   :  { %s776_s15 = smov 8  }
   0x4   :  { %22 = dma.hbm_to_vmem [thread:$0]  %s15_s11, 1024, %s17_s13, [#allocation5], %s775_s14, %s775_s14, %s776_s15  }
   0x5   :  { %770 = dma.done.wait [#allocation5], 1024  }
   0x6   :  { %771 = vsyncadd [#allocation5], 4294966272  ;;  %v44_v0 = vlaneseq  ;;  %v32_v2 = vld [vmem:[#allocation4 + $0x20] sm:$0xff]  ;;  %v30_v3 = vld [vmem:[#allocation4 + $0x10] sm:$0xff]  ;;  %s625_s20 = sshll.u32 %s1603_s2, 4  ;;  %s626_s20 = int_to_ptr.hbm [resolvable:$true] %s625_s20 }
   0x7   :  { %v28_v4 = vld [vmem:[#allocation4] sm:$0xff]  ;;  %v802_v5 = vmul.f32 %v32_v2, %v32_v2  ;;  %v804_v6 = vmul.f32 %v30_v3, %v30_v3  ;;  %v33_v8 = vld [vmem:[#allocation4 + $0x28] sm:$0xff]  ;;  %v31_v9 = vld [vmem:[#allocation4 + $0x18] sm:$0xff] }
   0x8   :  { %v799_v1 = vand.u32 127, %v44_v0  ;;  %v806_v7 = vmul.f32 %v28_v4, %v28_v4  ;;  %v29_v13 = vld [vmem:[#allocation4 + $0x8] sm:$0xff]  ;;  %v817_v14 = vmul.f32 %v33_v8, %v33_v8  ;;  %v819_v15 = vmul.f32 %v31_v9, %v31_v9  ;;  %v35_v20 = vld [vmem:[#allocation4 + $0x38] sm:$0xff]  ;;  %v34_v21 = vld [vmem:[#allocation4 + $0x30] sm:$0xff] }
   0x9   :  { %v37_v16 = vmul.f32 %v29_v13, %v29_v13  ;;  %v43_v22 = vmul.f32 %v35_v20, %v35_v20  ;;  %v42_v24 = vmul.f32 %v34_v21, %v34_v21 }
   0xa   :  { %vm47_vm0 = vcmp.lt.s32.totalorder %v799_v1, 32  ;;  %vm81_vm1 = vcmp.ge.s32.totalorder %v799_v1, 32  ;;  %vm82_vm2 = vcmp.lt.s32.totalorder %v799_v1, 64  ;;  %vm116_vm4 = vcmp.ge.s32.totalorder %v799_v1, 64 }
   0xb   :  { %v53_v10 = vsel %vm47_vm0, %v802_v5, 0.0  ;;  %v51_v11 = vsel %vm47_vm0, %v804_v6, 0.0  ;;  %v49_v12 = vsel %vm47_vm0, %v806_v7, 0.0  ;;  %v54_v17 = vsel %vm47_vm0, %v817_v14, 0.0  ;;  %vm831_vm3 = vmand %vm81_vm1, %vm82_vm2 }
   0xc   :  { %65 = vadd.xlane.f32.xlu2 %v53_v10  ;;  %61 = vadd.xlane.f32.xlu1 %v51_v11  ;;  %v52_v18 = vsel %vm47_vm0, %v819_v15, 0.0  ;;  %v50_v19 = vsel %vm47_vm0, %v37_v16, 0.0  ;;  %v56_v25 = vsel %vm47_vm0, %v43_v22, 0.0  ;;  %v84_v26 = vsel %vm831_vm3, %v806_v7, 0.0 }
   0xd   :  { %57 = vadd.xlane.f32.xlu0 %v49_v12  ;;  %v55_v27 = vsel %vm47_vm0, %v42_v24, 0.0  ;;  %v86_v28 = vsel %vm831_vm3, %v804_v6, 0.0  ;;  %v87_v29 = vsel %vm831_vm3, %v819_v15, 0.0  ;;  %v85_v30 = vsel %vm831_vm3, %v37_v16, 0.0 }
   0xe   :  { %v89_v31 = vsel %vm831_vm3, %v817_v14, 0.0  ;;  %v90_v32 = vsel %vm831_vm3, %v42_v24, 0.0  ;;  %v88_v33 = vsel %vm831_vm3, %v802_v5, 0.0  ;;  %vm117_vm5 = vcmp.lt.s32.totalorder %v799_v1, 96 }
   0xf   :  { %vm860_vm6 = vmand %vm116_vm4, %vm117_vm5  ;;  %v91_v37 = vsel %vm831_vm3, %v43_v22, 0.0  ;;  %vm151_vm7 = vcmp.ge.s32.totalorder %v799_v1, 96 }
  0x10   :  { %v119_v35 = vsel %vm860_vm6, %v806_v7, 0.0  ;;  %v120_v36 = vsel %vm860_vm6, %v37_v16, 0.0  ;;  %v122_v38 = vsel %vm860_vm6, %v819_v15, 0.0  ;;  %v123_v39 = vsel %vm860_vm6, %v802_v5, 0.0 }
  0x11   :  { %v121_v40 = vsel %vm860_vm6, %v804_v6, 0.0  ;;  %v125_v41 = vsel %vm860_vm6, %v42_v24, 0.0  ;;  %v126_v42 = vsel %vm860_vm6, %v43_v22, 0.0  ;;  %v124_v43 = vsel %vm860_vm6, %v817_v14, 0.0 }
  0x12   :  { %v155_v44 = vsel %vm151_vm7, %v37_v16, 0.0  ;;  %v156_v45 = vsel %vm151_vm7, %v804_v6, 0.0  ;;  %v154_v46 = vsel %vm151_vm7, %v806_v7, 0.0  ;;  %v158_v47 = vsel %vm151_vm7, %v802_v5, 0.0 }
  0x13   :  { %v159_v48 = vsel %vm151_vm7, %v817_v14, 0.0  ;;  %v157_v49 = vsel %vm151_vm7, %v819_v15, 0.0  ;;  %v161_v50 = vsel %vm151_vm7, %v43_v22, 0.0  ;;  %v160_v51 = vsel %vm151_vm7, %v42_v24, 0.0 }
  0x14   :  { %67 = vadd.xlane.f32.xlu2 %v54_v17  ;;  %63 = vadd.xlane.f32.xlu1 %v52_v18 }
  0x15   :  { %59 = vadd.xlane.f32.xlu0 %v50_v19 }
  0x1c   :  { %71 = vadd.xlane.f32.xlu1 %v56_v25  ;;  %92 = vadd.xlane.f32.xlu2 %v84_v26 }
  0x1d   :  { %69 = vadd.xlane.f32.xlu0 %v55_v27 }
  0x24   :  { %96 = vadd.xlane.f32.xlu1 %v86_v28  ;;  %98 = vadd.xlane.f32.xlu2 %v87_v29 }
  0x25   :  { %94 = vadd.xlane.f32.xlu0 %v85_v30 }
  0x2c   :  { %102 = vadd.xlane.f32.xlu1 %v89_v31  ;;  %104 = vadd.xlane.f32.xlu2 %v90_v32 }
  0x2d   :  { %100 = vadd.xlane.f32.xlu0 %v88_v33 }
  0x34   :  { %127 = vadd.xlane.f32.xlu1 %v119_v35  ;;  %129 = vadd.xlane.f32.xlu2 %v120_v36 }
  0x35   :  { %106 = vadd.xlane.f32.xlu0 %v91_v37 }
  0x3c   :  { %133 = vadd.xlane.f32.xlu1 %v122_v38  ;;  %135 = vadd.xlane.f32.xlu2 %v123_v39 }
  0x3d   :  { %131 = vadd.xlane.f32.xlu0 %v121_v40 }
  0x44   :  { %139 = vadd.xlane.f32.xlu1 %v125_v41  ;;  %141 = vadd.xlane.f32.xlu2 %v126_v42 }
  0x45   :  { %137 = vadd.xlane.f32.xlu0 %v124_v43 }
  0x4c   :  { %164 = vadd.xlane.f32.xlu1 %v155_v44  ;;  %166 = vadd.xlane.f32.xlu2 %v156_v45 }
  0x4d   :  { %162 = vadd.xlane.f32.xlu0 %v154_v46 }
  0x54   :  { %170 = vadd.xlane.f32.xlu1 %v158_v47  ;;  %172 = vadd.xlane.f32.xlu2 %v159_v48 }
  0x55   :  { %168 = vadd.xlane.f32.xlu0 %v157_v49 }
  0x5c   :  { %176 = vadd.xlane.f32.xlu1 %v161_v50 }
  0x5d   :  { %174 = vadd.xlane.f32.xlu0 %v160_v51 }
  0x7f   :  { %v66_v52 = vpop.xlane.xlu2 %65  ;;  %v62_v53 = vpop.xlane.xlu1 %61 }
  0x80   :  { %v58_v54 = vpop.xlane.xlu0 %57  ;;  %v75_v13 = vsel %vm47_vm0, %v62_v53, 0.0  ;;  %v77_v29 = vsel %vm47_vm0, %v66_v52, 0.0 }
  0x81   :  { %v73_v21 = vsel %vm47_vm0, %v58_v54, 0.0  ;;  %v984_v54 = vstv %s1601_s0  ;;  %s777_s0 = smov [#allocation7]  }
  0x82   :  { %s623_s17 = sshll.u32 %s777_s0, 4  ;;  %s624_s17 = int_to_ptr.vmem [resolvable:$true] %s623_s17 }
  0x87   :  { %v68_v55 = vpop.xlane.xlu2 %67  ;;  %v64_v56 = vpop.xlane.xlu1 %63 }
  0x88   :  { %v60_v57 = vpop.xlane.xlu0 %59  ;;  %v78_v30 = vsel %vm47_vm0, %v68_v55, 0.0  ;;  %v76_v43 = vsel %vm47_vm0, %v64_v56, 0.0 }
  0x89   :  { %v74_v14 = vsel %vm47_vm0, %v60_v57, 0.0 }
  0x8f   :  { %v72_v58 = vpop.xlane.xlu1 %71  ;;  %v93_v59 = vpop.xlane.xlu2 %92 }
  0x90   :  { %v70_v60 = vpop.xlane.xlu0 %69  ;;  %v108_v26 = vsel %vm831_vm3, %v93_v59, %v73_v21  ;;  %v80_v49 = vsel %vm47_vm0, %v72_v58, 0.0 }
  0x91   :  { %v79_v53 = vsel %vm47_vm0, %v70_v60, 0.0 }
  0x97   :  { %v97_v61 = vpop.xlane.xlu1 %96  ;;  %v99_v62 = vpop.xlane.xlu2 %98 }
  0x98   :  { %v95_v63 = vpop.xlane.xlu0 %94  ;;  %v110_v15 = vsel %vm831_vm3, %v97_v61, %v75_v13  ;;  %v111_v47 = vsel %vm831_vm3, %v99_v62, %v76_v43 }
  0x99   :  { %v109_v16 = vsel %vm831_vm3, %v95_v63, %v74_v14 }
  0x9f   :  { %v103_v0 = vpop.xlane.xlu1 %102  ;;  %v909_v2 = vpop.xlane.xlu2 %104 }
  0xa0   :  { %v101_v3 = vpop.xlane.xlu0 %100  ;;  %v113_v31 = vsel %vm831_vm3, %v103_v0, %v78_v30  ;;  %v114_v60 = vsel %vm831_vm3, %v909_v2, %v79_v53 }
  0xa1   :  { %v112_v32 = vsel %vm831_vm3, %v101_v3, %v77_v29 }
  0xa7   :  { %v128_v4 = vpop.xlane.xlu1 %127  ;;  %v130_v5 = vpop.xlane.xlu2 %129 }
  0xa8   :  { %v107_v6 = vpop.xlane.xlu0 %106  ;;  %v144_v17 = vsel %vm860_vm6, %v130_v5, %v109_v16  ;;  %v143_v27 = vsel %vm860_vm6, %v128_v4, %v108_v26 }
  0xa9   :  { %v115_v57 = vsel %vm831_vm3, %v107_v6, %v80_v49 }
  0xaf   :  { %v134_v7 = vpop.xlane.xlu1 %133  ;;  %v136_v8 = vpop.xlane.xlu2 %135 }
  0xb0   :  { %v132_v9 = vpop.xlane.xlu0 %131  ;;  %v147_v35 = vsel %vm860_vm6, %v136_v8, %v112_v32  ;;  %v146_v50 = vsel %vm860_vm6, %v134_v7, %v111_v47 }
  0xb1   :  { %v145_v18 = vsel %vm860_vm6, %v132_v9, %v110_v15 }
  0xb7   :  { %v911_v10 = vpop.xlane.xlu1 %139  ;;  %v142_v11 = vpop.xlane.xlu2 %141 }
  0xb8   :  { %v138_v12 = vpop.xlane.xlu0 %137  ;;  %v150_v61 = vsel %vm860_vm6, %v142_v11, %v115_v57 }
  0xb9   :  { %v148_v36 = vsel %vm860_vm6, %v138_v12, %v113_v31 }
  0xbf   :  { %v165_v19 = vpop.xlane.xlu1 %164  ;;  %v167_v20 = vpop.xlane.xlu2 %166 }
  0xc0   :  { %v929_v22 = vsel %vm151_vm7, %v165_v19, %v144_v17  ;;  %v933_v24 = vsel %vm151_vm7, %v167_v20, %v145_v18  ;;  %v163_v25 = vpop.xlane.xlu0 %162 }
  0xc1   :  { %650 = vrsqrt.f32 %v929_v22  ;;  %v943_v28 = vsel %vm151_vm7, %v163_v25, %v143_v27  ;;  %vm205_vm8 = vcmp.eq.f32.partialorder %v929_v22, inf  ;;  %vm207_vm9 = vcmp.eq.f32.partialorder %v929_v22, 0.0 }
  0xc2   :  { %652 = vrsqrt.f32 %v933_v24  ;;  %v208_v0 = vand.u32 2147483648, %v929_v22  ;;  %vm217_vm10 = vcmp.eq.f32.partialorder %v933_v24, inf  ;;  %vm219_vm11 = vcmp.eq.f32.partialorder %v933_v24, 0.0 }
  0xc3   :  { %654 = vrsqrt.f32 %v943_v28  ;;  %v220_v13 = vand.u32 2147483648, %v933_v24  ;;  %vm193_vm12 = vcmp.eq.f32.partialorder %v943_v28, inf  ;;  %v196_v20 = vand.u32 2147483648, %v943_v28 }
  0xc4   :  { %vm195_vm13 = vcmp.eq.f32.partialorder %v943_v28, 0.0 }
  0xc7   :  { %v651_v33 = vpop.eup %650  ;;  %v171_v37 = vpop.xlane.xlu1 %170 }
  0xc8   :  { %v173_v38 = vpop.xlane.xlu2 %172  ;;  %v653_v39 = vpop.eup %652  ;;  %v199_v40 = vmul.f32 %v651_v33, %v929_v22  ;;  %v961_v41 = vsel %vm151_vm7, %v171_v37, %v147_v35 }
  0xc9   :  { %v965_v42 = vsel %vm151_vm7, %v173_v38, %v148_v36  ;;  %v211_v44 = vmul.f32 %v653_v39, %v933_v24  ;;  %656 = vrsqrt.f32 %v961_v41  ;;  %v169_v45 = vpop.xlane.xlu0 %168  ;;  %v655_v46 = vpop.eup %654  ;;  %vm241_vm14 = vcmp.eq.f32.partialorder %v961_v41, inf }
  0xca   :  { %v200_v48 = vmul.f32 %v651_v33, %v199_v40  ;;  %658 = vrsqrt.f32 %v965_v42  ;;  %v187_v52 = vmul.f32 %v655_v46, %v943_v28  ;;  %v988_v56 = vsel %vm151_vm7, %v169_v45, %v146_v50 }
  0xcb   :  { %v212_v51 = vmul.f32 %v653_v39, %v211_v44  ;;  %660 = vrsqrt.f32 %v988_v56  ;;  %v149_v40 = vsel %vm860_vm6, %v911_v10, %v114_v60  ;;  %v244_v50 = vand.u32 2147483648, %v961_v41 }
  0xcc   :  { %v201_v55 = vmul.f32 0.5, %v200_v48  ;;  %v188_v59 = vmul.f32 %v655_v46, %v187_v52  ;;  %vm253_vm15 = vcmp.eq.f32.partialorder %v965_v42, inf  ;;  %v256_v1 = vand.u32 2147483648, %v965_v42 }
  0xcd   :  { %v213_v58 = vmul.f32 0.5, %v212_v51  ;;  %vm243_vm0 = vcmp.eq.f32.partialorder %v961_v41, 0.0  ;;  %vm255_vm1 = vcmp.eq.f32.partialorder %v965_v42, 0.0  ;;  %vm229_vm2 = vcmp.eq.f32.partialorder %v988_v56, inf }
  0xce   :  { %v202_v62 = vsub.f32 1.5, %v201_v55  ;;  %v189_v4 = vmul.f32 0.5, %v188_v59  ;;  %vm231_vm3 = vcmp.eq.f32.partialorder %v988_v56, 0.0 }
  0xcf   :  { %v657_v63 = vpop.eup %656  ;;  %v214_v3 = vsub.f32 1.5, %v213_v58  ;;  %v177_v5 = vpop.xlane.xlu1 %176 }
  0xd0   :  { %v659_v6 = vpop.eup %658  ;;  %v203_v7 = vmul.f32 %v651_v33, %v202_v62  ;;  %v235_v23 = vmul.f32 %v657_v63, %v961_v41  ;;  %v1005_v2 = vsel %vm151_vm7, %v177_v5, %v150_v61  ;;  %v190_v9 = vsub.f32 1.5, %v189_v4 }
  0xd1   :  { %v215_v8 = vmul.f32 %v653_v39, %v214_v3  ;;  %v247_v11 = vmul.f32 %v659_v6, %v965_v42  ;;  %662 = vrsqrt.f32 %v1005_v2  ;;  %v661_v15 = vpop.eup %660  ;;  %v175_v39 = vpop.xlane.xlu0 %174  ;;  %vm277_vm4 = vcmp.eq.f32.partialorder %v1005_v2, inf }
  0xd2   :  { %v204_v12 = vmul.f32 %v203_v7, %v929_v22  ;;  %v236_v14 = vmul.f32 %v657_v63, %v235_v23  ;;  %v191_v17 = vmul.f32 %v655_v46, %v190_v9  ;;  %v223_v25 = vmul.f32 %v661_v15, %v988_v56 }
  0xd3   :  { %v216_v16 = vmul.f32 %v215_v8, %v933_v24  ;;  %v248_v18 = vmul.f32 %v659_v6, %v247_v11  ;;  %v1047_v34 = vsel %vm151_vm7, %v175_v39, %v149_v40  ;;  %v280_v9 = vand.u32 2147483648, %v1005_v2 }
  0xd4   :  { %v206_v19 = vsel %vm205_vm8, %v929_v22, %v204_v12  ;;  %v237_v21 = vmul.f32 0.5, %v236_v14  ;;  %v192_v29 = vmul.f32 %v191_v17, %v943_v28  ;;  %v224_v35 = vmul.f32 %v661_v15, %v223_v25 }
  0xd5   :  { %v209_v26 = vsel %vm207_vm9, %v208_v0, %v206_v19  ;;  %v218_v27 = vsel %vm217_vm10, %v933_v24, %v216_v16  ;;  %v249_v30 = vmul.f32 0.5, %v248_v18  ;;  %vm279_vm5 = vcmp.eq.f32.partialorder %v1005_v2, 0.0 }
  0xd6   :  { %v283_v31 = vmax.f32 %v209_v26, 1e-15  ;;  %v221_v32 = vsel %vm219_vm11, %v220_v13, %v218_v27  ;;  %v238_v33 = vsub.f32 1.5, %v237_v21  ;;  %v194_v22 = vsel %vm193_vm12, %v943_v28, %v192_v29 }
  0xd7   :  { %v1027_v36 = vpop.eup %662  ;;  %v284_v37 = vmax.f32 %v221_v32, 1e-15  ;;  %v250_v38 = vsub.f32 1.5, %v249_v30  ;;  %v197_v43 = vsel %vm195_vm13, %v196_v20, %v194_v22  ;;  %v225_v48 = vmul.f32 0.5, %v224_v35 }
  0xd8   :  { %v1037_v24 = vmul.f32 %v984_v54, %v283_v31  ;;  %v239_v44 = vmul.f32 %v657_v63, %v238_v33  ;;  %v282_v46 = vmax.f32 %v197_v43, 1e-15  ;;  %v271_v28 = vmul.f32 %v1027_v36, %v1005_v2 }
  0xd9   :  { %v1040_v45 = vmul.f32 %v984_v54, %v284_v37  ;;  %v251_v47 = vmul.f32 %v659_v6, %v250_v38  ;;  %v226_v52 = vsub.f32 1.5, %v225_v48  ;;  %vm265_vm6 = vcmp.eq.f32.partialorder %v1047_v34, inf }
  0xda   :  { %664 = vrcp.f32 %v1037_v24  ;;  %v1051_v10 = vmul.f32 %v984_v54, %v282_v46  ;;  %v240_v49 = vmul.f32 %v239_v44, %v961_v41  ;;  %v272_v53 = vmul.f32 %v1027_v36, %v271_v28 }
  0xdb   :  { %666 = vrcp.f32 %v1040_v45  ;;  %v252_v51 = vmul.f32 %v251_v47, %v965_v42  ;;  %v227_v61 = vmul.f32 %v661_v15, %v226_v52  ;;  %v1081_v7 = vclamps-f32 %v1037_v24, 0.9999999 }
  0xdc   :  { %668 = vrsqrt.f32 %v1047_v34  ;;  %v242_v55 = vsel %vm241_vm14, %v961_v41, %v240_v49  ;;  %v232_v41 = vand.u32 2147483648, %v988_v56  ;;  %v273_v5 = vmul.f32 0.5, %v272_v53 }
  0xdd   :  { %670 = vrcp.f32 %v1051_v10  ;;  %v254_v57 = vsel %vm253_vm15, %v965_v42, %v252_v51  ;;  %v245_v59 = vsel %vm243_vm0, %v244_v50, %v242_v55  ;;  %v228_v4 = vmul.f32 %v227_v61, %v988_v56 }
  0xde   :  { %v257_v60 = vsel %vm255_vm1, %v256_v1, %v254_v57  ;;  %v286_v0 = vmax.f32 %v245_v59, 1e-15  ;;  %v509_v23 = vand.u32 2147483648, %v1037_v24  ;;  %v524_v14 = vand.u32 2147483648, %v1040_v45 }
  0xdf   :  { %v287_v3 = vmax.f32 %v257_v60, 1e-15  ;;  %v1096_v16 = vclamps-f32 %v1040_v45, 0.9999999  ;;  %v494_v19 = vand.u32 2147483648, %v1051_v10  ;;  %v230_v20 = vsel %vm229_vm2, %v988_v56, %v228_v4 }
  0xe0   :  { %v1066_v58 = vpop.eup %664  ;;  %v1085_v8 = vmul.f32 %v984_v54, %v286_v0  ;;  %v274_v21 = vsub.f32 1.5, %v273_v5  ;;  %v1107_v26 = vor.u32 1.1754944e-38, %v509_v23  ;;  %v1111_v29 = vclamps-f32 %v1051_v10, 0.9999999 }
  0xe1   :  { %v1069_v62 = vpop.eup %666  ;;  %v499_v63 = vmul.f32 %v1066_v58, %v1037_v24  ;;  %v1093_v15 = vmul.f32 %v984_v54, %v287_v3  ;;  %v1115_v32 = vor.u32 1.1754944e-38, %v524_v14  ;;  %v1121_v37 = vor.u32 1.1754944e-38, %v494_v19 }
  0xe2   :  { %v514_v42 = vmul.f32 %v1069_v62, %v1040_v45  ;;  %v1078_v6 = vpop.eup %668  ;;  %672 = vrcp.f32 %v1085_v8  ;;  %1614 = vst [vmem:[#allocation10_spill] sm:$0xff] %v1107_v26  ;;  %v1124_v22 = vclamps-f32 %v1085_v8, 0.9999999  ;;  %v233_v38 = vsel %vm231_vm3, %v232_v41, %v230_v20 }
  0xe3   :  { %v1088_v11 = vpop.eup %670  ;;  %v500_v12 = vsub.f32 1.0, %v499_v63  ;;  %v259_v25 = vmul.f32 %v1078_v6, %v1047_v34  ;;  %1615 = vst [vmem:[#allocation11_spill] sm:$0xff] %v1115_v32  ;;  %674 = vrcp.f32 %v1093_v15  ;;  %v554_v39 = vand.u32 2147483648, %v1085_v8 }
  0xe4   :  { %v515_v17 = vsub.f32 1.0, %v514_v42  ;;  %v484_v18 = vmul.f32 %v1088_v11, %v1051_v10  ;;  %1616 = vst [vmem:[#allocation12_spill] sm:$0xff] %v1121_v37  ;;  %v285_v40 = vmax.f32 %v233_v38, 1e-15  ;;  %v275_v43 = vmul.f32 %v1027_v36, %v274_v21 }
  0xe5   :  { %v501_v31 = vmul.f32 %v1066_v58, %v500_v12  ;;  %v260_v44 = vmul.f32 %v1078_v6, %v259_v25  ;;  %v569_v48 = vand.u32 2147483648, %v1093_v15  ;;  %v315_v28 = vadd.f32 1.0, %v1111_v29 }
  0xe6   :  { %v485_v30 = vsub.f32 1.0, %v484_v18  ;;  %v516_v35 = vmul.f32 %v1069_v62, %v515_v17  ;;  %v1141_v50 = vmul.f32 %v984_v54, %v285_v40  ;;  %v276_v36 = vmul.f32 %v275_v43, %v1005_v2 }
  0xe7   :  { %v1138_v56 = vadd.f32 %v1066_v58, %v501_v31  ;;  %v261_v51 = vmul.f32 0.5, %v260_v44  ;;  %v1147_v1 = vclamps-f32 %v1093_v15, 0.9999999  ;;  %676 = vlog2.f32 %v315_v28 }
  0xe8   :  { %v486_v46 = vmul.f32 %v1088_v11, %v485_v30  ;;  %v1135_v49 = vpop.eup %672  ;;  %v318_v53 = vmul.f32 -0.5, %v1111_v29  ;;  %v1153_v57 = vadd.f32 %v1069_v62, %v516_v35  ;;  %v1155_v59 = vor.u32 1.1754944e-38, %v554_v39 }
  0xe9   :  { %v544_v52 = vmul.f32 %v1135_v49, %v1085_v8  ;;  %v1150_v55 = vpop.eup %674  ;;  %678 = vrcp.f32 %v1141_v50  ;;  %v1165_v41 = vor.u32 1.1754944e-38, %v569_v48  ;;  %vm267_vm7 = vcmp.eq.f32.partialorder %v1047_v34, 0.0 }
  0xea   :  { %1617 = vst [vmem:[#allocation13_spill] sm:$0xff] %v1153_v57  ;;  %v1161_v61 = vadd.f32 %v1088_v11, %v486_v46  ;;  %v559_v0 = vmul.f32 %v1150_v55, %v1093_v15  ;;  %v278_v42 = vsel %vm277_vm4, %v1005_v2, %v276_v36  ;;  %v262_v3 = vsub.f32 1.5, %v261_v51 }
  0xeb   :  { %1618 = vst [vmem:[#allocation14_spill] sm:$0xff] %v1155_v59  ;;  %v545_v63 = vsub.f32 1.0, %v544_v52  ;;  %v268_v4 = vand.u32 2147483648, %v1047_v34  ;;  %v321_v5 = vand.u32 2147483647, %v1111_v29  ;;  %v539_v12 = vand.u32 2147483648, %v1141_v50 }
  0xec   :  { %1619 = vst [vmem:[#allocation15_spill] sm:$0xff] %v1165_v41  ;;  %v560_v23 = vsub.f32 1.0, %v559_v0  ;;  %v281_v14 = vsel %vm279_vm5, %v280_v9, %v278_v42  ;;  %v319_v17 = vadd.f32 1.0, %v318_v53  ;;  %v263_v20 = vmul.f32 %v1078_v6, %v262_v3 }
  0xed   :  { %v546_v18 = vmul.f32 %v1135_v49, %v545_v63  ;;  %v289_v19 = vmax.f32 %v281_v14, 1e-15  ;;  %v324_v21 = vadd.f32 1.0, %v1081_v7  ;;  %v677_v25 = vpop.eup %676  ;;  %v1183_v31 = vclamps-f32 %v1141_v50, 0.9999999 }
  0xee   :  { %v561_v30 = vmul.f32 %v1150_v55, %v560_v23  ;;  %v327_v38 = vmul.f32 -0.5, %v1081_v7  ;;  %v264_v39 = vmul.f32 %v263_v20, %v1047_v34  ;;  %vm1193_vm8 = vcmp.lt.f32.partialorder %v321_v5, 0.0004427343 }
  0xef   :  { %v1187_v2 = vpop.eup %678  ;;  %v1190_v9 = vmul.f32 %v984_v54, %v289_v19  ;;  %680 = vlog2.f32 %v324_v21  ;;  %v1199_v43 = vor.u32 1.1754944e-38, %v539_v12  ;;  %v1201_v44 = vmul.f32 0.6931472, %v677_v25 }
  0xf0   :  { %v529_v40 = vmul.f32 %v1187_v2, %v1141_v50  ;;  %v1204_v46 = vmul.f32 %v1111_v29, %v319_v17  ;;  %v1207_v48 = vadd.f32 %v1135_v49, %v546_v18  ;;  %v1210_v28 = vadd.f32 %v1150_v55, %v561_v30 }
  0xf1   :  { %1622 = vst [vmem:[#allocation16_spill] sm:$0xff] %v1199_v43  ;;  %682 = vrcp.f32 %v1190_v9  ;;  %v330_v36 = vand.u32 2147483647, %v1081_v7  ;;  %v1215_v52 = vclamps-f32 %v1190_v9, 0.9999999  ;;  %v266_v53 = vsel %vm265_vm6, %v1047_v34, %v264_v39 }
  0xf2   :  { %1623 = vst [vmem:[#allocation17_spill] sm:$0xff] %v1207_v48  ;;  %v530_v51 = vsub.f32 1.0, %v529_v40  ;;  %v328_v63 = vadd.f32 1.0, %v327_v38  ;;  %v599_v42 = vand.u32 2147483648, %v1190_v9  ;;  %v269_v3 = vsel %vm267_vm7, %v268_v4, %v266_v53 }
  0xf3   :  { %1624 = vst [vmem:[#allocation18_spill] sm:$0xff] %v1210_v28  ;;  %v333_v5 = vadd.f32 1.0, %v1096_v16  ;;  %v288_v12 = vmax.f32 %v269_v3, 1e-15  ;;  %v336_v17 = vmul.f32 -0.5, %v1096_v16  ;;  %v342_v20 = vadd.f32 1.0, %v1183_v31 }
  0xf4   :  { %v531_v23 = vmul.f32 %v1187_v2, %v530_v51  ;;  %v339_v19 = vand.u32 2147483647, %v1096_v16  ;;  %v345_v34 = vmul.f32 -0.5, %v1183_v31  ;;  %v1240_v25 = vmul.f32 %v1081_v7, %v328_v63 }
  0xf5   :  { %v681_v18 = vpop.eup %680  ;;  %684 = vlog2.f32 %v333_v5  ;;  %v1235_v4 = vmul.f32 %v984_v54, %v288_v12  ;;  %v337_v30 = vadd.f32 1.0, %v336_v17  ;;  %vm1244_vm9 = vcmp.lt.f32.partialorder %v330_v36, 0.0004427343 }
  0xf6   :  { %v1237_v21 = vmul.f32 0.6931472, %v681_v18  ;;  %686 = vlog2.f32 %v342_v20  ;;  %v346_v40 = vadd.f32 1.0, %v345_v34  ;;  %v348_v51 = vand.u32 2147483647, %v1183_v31 }
  0xf7   :  { %v1242_v38 = vpop.eup %682  ;;  %v1251_v53 = vor.u32 1.1754944e-38, %v599_v42  ;;  %688 = vrcp.f32 %v1235_v4  ;;  %vm1254_vm10 = vcmp.lt.f32.partialorder %v339_v19, 0.0004427343  ;;  %v1259_v36 = vadd.f32 %v1187_v2, %v531_v23 }
  0xf8   :  { %v589_v54 = vmul.f32 %v1242_v38, %v1190_v9  ;;  %v644_v3 = vclamps-f32 %v1235_v4, 0.9999999  ;;  %v584_v12 = vand.u32 2147483648, %v1235_v4  ;;  %v1269_v18 = vmul.f32 %v1096_v16, %v337_v30 }
  0xf9   :  { %1627 = vst [vmem:[#allocation19_spill] sm:$0xff] %v1251_v53  ;;  %v1272_v19 = vmul.f32 %v1183_v31, %v346_v40  ;;  %vm1274_vm11 = vcmp.lt.f32.partialorder %v348_v51, 0.0004427343  ;;  %v351_v34 = vadd.f32 1.0, %v1124_v22  ;;  %v357_v0 = vand.u32 2147483647, %v1124_v22 }
  0xfa   :  { %1630 = vst [vmem:[#allocation20_spill] sm:$0xff] %v1259_v36  ;;  %v590_v17 = vsub.f32 1.0, %v589_v54  ;;  %v354_v54 = vmul.f32 -0.5, %v1124_v22  ;;  %v360_v30 = vadd.f32 1.0, %v1147_v1  ;;  %v363_v40 = vmul.f32 -0.5, %v1147_v1 }
  0xfb   :  { %v685_v23 = vpop.eup %684  ;;  %v1286_v35 = vor.u32 1.1754944e-38, %v584_v12  ;;  %690 = vlog2.f32 %v351_v34  ;;  %v366_v27 = vand.u32 2147483647, %v1147_v1  ;;  %vm1296_vm12 = vcmp.lt.f32.partialorder %v357_v0, 0.0004427343 }
  0xfc   :  { %v591_v5 = vmul.f32 %v1242_v38, %v590_v17  ;;  %v1282_v60 = vmul.f32 0.6931472, %v685_v23  ;;  %v687_v47 = vpop.eup %686  ;;  %v355_v51 = vadd.f32 1.0, %v354_v54  ;;  %692 = vlog2.f32 %v360_v30 }
  0xfd   :  { %1633 = vst [vmem:[#allocation21_spill] sm:$0xff] %v1286_v35  ;;  %v1289_v13 = vpop.eup %688  ;;  %v1294_v42 = vmul.f32 0.6931472, %v687_v47  ;;  %vm1313_vm13 = vcmp.lt.f32.partialorder %v366_v27, 0.0004427343  ;;  %v369_v54 = vadd.f32 1.0, %v644_v3  ;;  %vm503_vm2 = vweird.f32 %v1037_v24 }
  0xfe   :  { %v1292_v33 = vadd.f32 %v1242_v38, %v591_v5  ;;  %v574_v12 = vmul.f32 %v1289_v13, %v1235_v4  ;;  %v1307_v34 = vmul.f32 %v1124_v22, %v355_v51  ;;  %v364_v5 = vadd.f32 1.0, %v363_v40 }
  0xff   :  { %v372_v30 = vmul.f32 -0.5, %v644_v3  ;;  %v375_v23 = vand.u32 2147483647, %v644_v3  ;;  %v378_v51 = vadd.f32 1.0, %v1215_v52  ;;  %694 = vlog2.f32 %v369_v54 }
 0x100   :  { %1634 = vst [vmem:[#allocation22_spill] sm:$0xff] %v1292_v33  ;;  %v575_v14 = vsub.f32 1.0, %v574_v12  ;;  %v1318_v53 = vmul.f32 %v1147_v1, %v364_v5  ;;  %v381_v33 = vmul.f32 -0.5, %v1215_v52  ;;  %v384_v35 = vand.u32 2147483647, %v1215_v52 }
 0x101   :  { %v373_v40 = vadd.f32 1.0, %v372_v30  ;;  %v691_v47 = vpop.eup %690  ;;  %vm1324_vm14 = vcmp.lt.f32.partialorder %v375_v23, 0.0004427343  ;;  %v1639_v41 = vmov 0  ;;  %696 = vlog2.f32 %v378_v51 }
 0x102   :  { %v576_v27 = vmul.f32 %v1289_v13, %v575_v14  ;;  %v1640_v41 = vsel %vm1324_vm14, 4294967295, %v1639_v41  ;;  %v387_v12 = vsub.f32 0.0, %v1111_v29  ;;  %v693_v5 = vpop.eup %692  ;;  %v1329_v28 = vmul.f32 0.6931472, %v691_v47 }
 0x103   :  { %1641 = vst [vmem:[#allocation23_spill] sm:$0xff] %v1640_v41  ;;  %v1331_v59 = vmul.f32 %v644_v3, %v373_v40  ;;  %v382_v54 = vadd.f32 1.0, %v381_v33  ;;  %vm1333_vm15 = vcmp.lt.f32.partialorder %v384_v35, 0.0004427343  ;;  %v1643_v30 = vmov 0 }
 0x104   :  { %v1644_v30 = vsel %vm1333_vm15, 4294967295, %v1643_v30  ;;  %v1338_v48 = vadd.f32 %v1289_v13, %v576_v27  ;;  %v1340_v14 = vmul.f32 0.6931472, %v693_v5  ;;  %v388_v23 = vsub.f32 0.0, %v1081_v7 }
 0x105   :  { %1642 = vst [vmem:[#allocation24_spill] sm:$0xff] %v1331_v59  ;;  %v389_v51 = vsub.f32 0.0, %v1096_v16  ;;  %v1349_v33 = vmul.f32 %v1215_v52, %v382_v54  ;;  %v390_v35 = vsub.f32 0.0, %v1183_v31  ;;  %v391_v47 = vsub.f32 0.0, %v1124_v22  ;;  %v695_v5 = vpop.eup %694 }
 0x106   :  { %1645 = vst [vmem:[#allocation25_spill] sm:$0xff] %v1338_v48  ;;  %v1358_v7 = vsub.f32 0.0, %v1147_v1  ;;  %v1360_v16 = vsub.f32 0.0, %v644_v3  ;;  %v1363_v27 = vsub.f32 0.0, %v1215_v52  ;;  %v395_v54 = vadd.f32 1.0, %v387_v12 }
 0x107   :  { %1646 = vst [vmem:[#allocation26_spill] sm:$0xff] %v1349_v33  ;;  %v398_v29 = vmul.f32 -0.5, %v387_v12  ;;  %v401_v48 = vand.u32 2147483647, %v387_v12  ;;  %v404_v31 = vadd.f32 1.0, %v388_v23  ;;  %v697_v43 = vpop.eup %696  ;;  %v407_v32 = vmul.f32 -0.5, %v388_v23 }
 0x108   :  { %v1365_v22 = vmul.f32 0.6931472, %v695_v5  ;;  %v410_v36 = vand.u32 2147483647, %v388_v23  ;;  %v413_v57 = vadd.f32 1.0, %v389_v51  ;;  %698 = vlog2.f32 %v395_v54 }
 0x109   :  { %v1367_v40 = vmul.f32 0.6931472, %v697_v43  ;;  %v399_v1 = vadd.f32 1.0, %v398_v29  ;;  %vm1369_vm0 = vcmp.lt.f32.partialorder %v401_v48, 0.0004427343  ;;  %700 = vlog2.f32 %v404_v31 }
 0x10a   :  { %1647 = vst [vmem:[#allocation27_spill] sm:$0xff] %v1365_v22  ;;  %v408_v26 = vadd.f32 1.0, %v407_v32  ;;  %vm1377_vm1 = vcmp.lt.f32.partialorder %v410_v36, 0.0004427343  ;;  %702 = vlog2.f32 %v413_v57  ;;  %v416_v29 = vmul.f32 -0.5, %v389_v51 }
 0x10b   :  { %1648 = vst [vmem:[#allocation28_spill] sm:$0xff] %v1367_v40  ;;  %v1385_v48 = vmul.f32 %v399_v1, %v387_v12  ;;  %v419_v37 = vand.u32 2147483647, %v389_v51  ;;  %v422_v41 = vadd.f32 1.0, %v390_v35  ;;  %v425_v52 = vmul.f32 -0.5, %v390_v35 }
 0x10c   :  { %v1387_v54 = vmul.f32 %v408_v26, %v388_v23  ;;  %v417_v31 = vadd.f32 1.0, %v416_v29  ;;  %v428_v32 = vand.u32 2147483647, %v390_v35  ;;  %v431_v36 = vadd.f32 1.0, %v391_v47 }
 0x10d   :  { %v434_v22 = vmul.f32 -0.5, %v391_v47  ;;  %vm1390_vm3 = vcmp.lt.f32.partialorder %v419_v37, 0.0004427343  ;;  %704 = vlog2.f32 %v422_v41  ;;  %v426_v12 = vadd.f32 1.0, %v425_v52 }
 0x10e   :  { %v437_v1 = vand.u32 2147483647, %v391_v47  ;;  %v699_v57 = vpop.eup %698  ;;  %v418_v43 = vmul.f32 %v417_v31, %v389_v51  ;;  %vm1394_vm4 = vcmp.lt.f32.partialorder %v428_v32, 0.0004427343  ;;  %706 = vlog2.f32 %v431_v36 }
 0x10f   :  { %v435_v23 = vadd.f32 1.0, %v434_v22  ;;  %v701_v29 = vpop.eup %700  ;;  %v397_v37 = vmul.f32 0.6931472, %v699_v57  ;;  %v427_v40 = vmul.f32 %v426_v12, %v390_v35  ;;  %v440_v41 = vadd.f32 1.0, %v1358_v7 }
 0x110   :  { %vm1400_vm7 = vcmp.lt.f32.partialorder %v437_v1, 0.0004427343  ;;  %v703_v51 = vpop.eup %702  ;;  %v406_v52 = vmul.f32 0.6931472, %v701_v29  ;;  %v443_v32 = vmul.f32 -0.5, %v1358_v7  ;;  %v449_v12 = vadd.f32 1.0, %v1360_v16 }
 0x111   :  { %v436_v31 = vmul.f32 %v435_v23, %v391_v47  ;;  %v446_v22 = vand.u32 2147483647, %v1358_v7  ;;  %v403_v35 = vsel %vm1369_vm0, %v1385_v48, %v397_v37  ;;  %v415_v36 = vmul.f32 0.6931472, %v703_v51 }
 0x112   :  { %708 = vlog2.f32 %v440_v41  ;;  %v412_v47 = vsel %vm1377_vm1, %v1387_v54, %v406_v52  ;;  %v444_v1 = vadd.f32 1.0, %v443_v32  ;;  %v452_v23 = vmul.f32 -0.5, %v1360_v16 }
 0x113   :  { %vm1417_vm15 = vcmp.lt.f32.partialorder %v446_v22, 0.0004427343  ;;  %v705_v29 = vpop.eup %704  ;;  %v421_v3 = vsel %vm1390_vm3, %v418_v43, %v415_v36  ;;  %710 = vlog2.f32 %v449_v12  ;;  %v455_v48 = vand.u32 2147483647, %v1360_v16 }
 0x114   :  { %v458_v37 = vadd.f32 1.0, %v1363_v27  ;;  %v707_v5 = vpop.eup %706  ;;  %v424_v54 = vmul.f32 0.6931472, %v705_v29  ;;  %v445_v41 = vmul.f32 %v444_v1, %v1358_v7  ;;  %v453_v51 = vadd.f32 1.0, %v452_v23 }
 0x115   :  { %v461_v52 = vmul.f32 -0.5, %v1363_v27  ;;  %v433_v59 = vmul.f32 0.6931472, %v707_v5  ;;  %vm1432_vm3 = vcmp.lt.f32.partialorder %v455_v48, 0.0004427343  ;;  %vm548_vm1 = vweird.f32 %v1085_v8 }
 0x116   :  { %712 = vlog2.f32 %v458_v37  ;;  %v464_v32 = vand.u32 2147483647, %v1363_v27  ;;  %v430_v7 = vsel %vm1394_vm4, %v427_v40, %v424_v54  ;;  %v454_v22 = vmul.f32 %v453_v51, %v1360_v16  ;;  %v1683_v37 = vld [vmem:[#allocation10_spill] sm:$0xff]  ;;  %v1690_v54 = vld [vmem:[#allocation27_spill] sm:$0xff] }
 0x117   :  { %v462_v36 = vadd.f32 1.0, %v461_v52  ;;  %v1663_v12 = vsel %vm1193_vm8, %v1204_v46, %v1201_v44  ;;  %vm563_vm0 = vweird.f32 %v1093_v15  ;;  %v439_v29 = vsel %vm1400_vm7, %v436_v31, %v433_v59 }
 0x118   :  { %v467_v1 = vsub.f32 %v1663_v12, %v403_v35  ;;  %v709_v23 = vpop.eup %708  ;;  %vm1451_vm6 = vcmp.lt.f32.partialorder %v464_v32, 0.0004427343  ;;  %v1666_v6 = vsel %vm1244_vm9, %v1240_v25, %v1237_v21  ;;  %v1667_v44 = vsel %vm1254_vm10, %v1269_v18, %v1282_v60  ;;  %v1694_v12 = vld [vmem:[#allocation20_spill] sm:$0xff] }
 0x119   :  { %v468_v40 = vsub.f32 %v1666_v6, %v412_v47  ;;  %v469_v46 = vsub.f32 %v1667_v44, %v421_v3  ;;  %vm1668_vm8 = vweird.f32 %v1088_v11  ;;  %vm1669_vm4 = vweird.f32 %v1051_v10  ;;  %v711_v16 = vpop.eup %710 }
 0x11a   :  { %vm1469_vm7 = vmor %vm1669_vm4, %vm1668_vm8  ;;  %vm578_vm5 = vweird.f32 %v1235_v4  ;;  %v442_v39 = vmul.f32 0.6931472, %v709_v23  ;;  %v463_v21 = vmul.f32 %v462_v36, %v1363_v27  ;;  %v1672_v25 = vsel %vm1274_vm11, %v1272_v19, %v1294_v42  ;;  %v1697_v23 = vld [vmem:[#allocation26_spill] sm:$0xff] }
 0x11b   :  { %v470_v60 = vsub.f32 %v1672_v25, %v430_v7  ;;  %v1673_v63 = vsel %vm1296_vm12, %v1307_v34, %v1329_v28  ;;  %vm593_vm9 = vweird.f32 %v1190_v9  ;;  %v475_v31 = vmul.f32 0.5, %v467_v1  ;;  %v1692_v7 = vld [vmem:[#allocation13_spill] sm:$0xff] }
 0x11c   :  { %v471_v18 = vsub.f32 %v1673_v63, %v439_v29  ;;  %v476_v35 = vmul.f32 0.5, %v468_v40  ;;  %v477_v47 = vmul.f32 0.5, %v469_v46  ;;  %v491_v20 = vsel %vm1469_vm7, %v1088_v11, %v1161_v61  ;;  %v713_v34 = vpop.eup %712  ;;  %v1698_v29 = vld [vmem:[#allocation28_spill] sm:$0xff]  ;;  %v1700_v40 = vld [vmem:[#allocation11_spill] sm:$0xff]  ;;  %v1709_v63 = vld [vmem:[#allocation14_spill] sm:$0xff] }
 0x11d   :  { %vm1674_vm10 = vweird.f32 %v1066_v58  ;;  %v448_v28 = vsel %vm1417_vm15, %v445_v41, %v442_v39  ;;  %v451_v42 = vmul.f32 0.6931472, %v711_v16  ;;  %v478_v19 = vmul.f32 0.5, %v470_v60  ;;  %v1706_v39 = vld [vmem:[#allocation17_spill] sm:$0xff]  ;;  %v1710_v16 = vld [vmem:[#allocation18_spill] sm:$0xff] }
 0x11e   :  { %vm505_vm11 = vmor %vm503_vm2, %vm1674_vm10  ;;  %v479_v17 = vmul.f32 0.5, %v471_v18  ;;  %v1675_v27 = vsel %vm1313_vm13, %v1318_v53, %v1340_v14  ;;  %v1676_v11 = vand.u32 2147483647, %v1051_v10  ;;  %v1677_v48 = vand.u32 2147483647, %v1037_v24  ;;  %v1682_v10 = vld [vmem:[#allocation12_spill] sm:$0xff] }
 0x11f   :  { %v472_v3 = vsub.f32 %v1675_v27, %v448_v28  ;;  %v506_v61 = vsel %vm505_vm11, %v1066_v58, %v1138_v56  ;;  %vm1678_vm15 = vweird.f32 %v1069_v62  ;;  %vm1679_vm8 = vweird.f32 %v1040_v45  ;;  %v1689_v56 = vld [vmem:[#allocation24_spill] sm:$0xff]  ;;  %v1715_v28 = vld [vmem:[#allocation15_spill] sm:$0xff] }
 0x120   :  { %vm493_vm12 = vcmp.eq.f32.partialorder %v1676_v11, 8.507059e+37  ;;  %vm508_vm2 = vcmp.eq.f32.partialorder %v1677_v48, 8.507059e+37  ;;  %vm1511_vm4 = vmor %vm1679_vm8, %vm1678_vm15  ;;  %v457_v53 = vsel %vm1432_vm3, %v454_v22, %v451_v42  ;;  %v460_v0 = vmul.f32 0.6931472, %v713_v34  ;;  %v714_v48 = vld [vmem:[#allocation4] sm:$0xff] }
 0x121   :  { %v496_v14 = vsel %vm493_vm12, %v1682_v10, %v491_v20  ;;  %v511_v5 = vsel %vm508_vm2, %v1683_v37, %v506_v61  ;;  %vm1684_vm13 = vweird.f32 %v1187_v2  ;;  %vm1685_vm7 = vweird.f32 %v1141_v50 }
 0x122   :  { %vm1523_vm10 = vmor %vm1685_vm7, %vm1684_vm13  ;;  %v1691_v41 = vsel %vm1324_vm14, %v1689_v56, %v1690_v54  ;;  %v480_v52 = vmul.f32 0.5, %v472_v3  ;;  %v497_v59 = vmul.f32 %v496_v14, %v475_v31  ;;  %v512_v43 = vmul.f32 %v511_v5, %v476_v35  ;;  %v1713_v35 = vld [vmem:[#allocation25_spill] sm:$0xff]  ;;  %v718_v5 = vld [vmem:[#allocation4 + $0x20] sm:$0xff] }
 0x123   :  { %v473_v51 = vsub.f32 %v1691_v41, %v457_v53  ;;  %v466_v32 = vsel %vm1451_vm6, %v463_v21, %v460_v0  ;;  %v521_v22 = vsel %vm1511_vm4, %v1069_v62, %v1692_v7  ;;  %v1693_v36 = vand.u32 2147483647, %v1040_v45  ;;  %v715_v53 = vld [vmem:[#allocation4 + $0x8] sm:$0xff]  ;;  %v716_v0 = vld [vmem:[#allocation4 + $0x10] sm:$0xff]  ;;  %v717_v14 = vld [vmem:[#allocation4 + $0x18] sm:$0xff] }
 0x124   :  { %v536_v1 = vsel %vm1523_vm10, %v1187_v2, %v1694_v12  ;;  %vm1695_vm14 = vweird.f32 %v1135_v49  ;;  %vm1696_vm6 = vnez %v1644_v30  ;;  %v1701_v44 = vand.u32 2147483647, %v1141_v50  ;;  %v1705_v30 = vld [vmem:[#allocation16_spill] sm:$0xff]  ;;  %v721_v54 = vld [vmem:[#allocation4 + $0x38] sm:$0xff] }
 0x125   :  { %vm523_vm3 = vcmp.eq.f32.partialorder %v1693_v36, 8.507059e+37  ;;  %vm550_vm11 = vmor %vm548_vm1, %vm1695_vm14  ;;  %v1699_v26 = vsel %vm1696_vm6, %v1697_v23, %v1698_v29  ;;  %v481_v62 = vmul.f32 0.5, %v473_v51  ;;  %vm1702_vm2 = vweird.f32 %v1150_v55 }
 0x126   :  { %v474_v6 = vsub.f32 %v1699_v26, %v466_v32  ;;  %v526_v45 = vsel %vm523_vm3, %v1700_v40, %v521_v22  ;;  %vm538_vm12 = vcmp.eq.f32.partialorder %v1701_v44, 8.507059e+37  ;;  %vm1560_vm15 = vmor %vm563_vm0, %vm1702_vm2  ;;  %v551_v21 = vsel %vm550_vm11, %v1135_v49, %v1706_v39 }
 0x127   :  { %v527_v46 = vmul.f32 %v526_v45, %v477_v47  ;;  %v541_v33 = vsel %vm538_vm12, %v1705_v30, %v536_v1  ;;  %v1707_v25 = vand.u32 2147483647, %v1085_v8  ;;  %vm1708_vm8 = vweird.f32 %v1289_v13 }
 0x128   :  { %vm580_vm4 = vmor %vm578_vm5, %vm1708_vm8  ;;  %v482_v50 = vmul.f32 0.5, %v474_v6  ;;  %v542_v60 = vmul.f32 %v541_v33, %v478_v19  ;;  %v566_v31 = vsel %vm1560_vm15, %v1150_v55, %v1710_v16  ;;  %vm1711_vm0 = vweird.f32 %v1242_v38  ;;  %v1716_v19 = vld [vmem:[#allocation21_spill] sm:$0xff]  ;;  %v1717_v55 = vld [vmem:[#allocation22_spill] sm:$0xff] }
 0x129   :  { %vm553_vm1 = vcmp.eq.f32.partialorder %v1707_v25, 8.507059e+37  ;;  %vm595_vm13 = vmor %vm593_vm9, %vm1711_vm0  ;;  %v1712_v49 = vand.u32 2147483647, %v1093_v15  ;;  %v581_v47 = vsel %vm580_vm4, %v1289_v13, %v1713_v35  ;;  %v1714_v20 = vand.u32 2147483647, %v1235_v4  ;;  %v1719_v15 = vld [vmem:[#allocation19_spill] sm:$0xff] }
 0x12a   :  { %v556_v18 = vsel %vm553_vm1, %v1709_v63, %v551_v21  ;;  %v596_v27 = vsel %vm595_vm13, %v1242_v38, %v1717_v55  ;;  %v1718_v3 = vand.u32 2147483647, %v1190_v9  ;;  %v603_v57 = vmul.f32 %v714_v48, %v497_v59  ;;  %v719_v38 = vld [vmem:[#allocation4 + $0x28] sm:$0xff]  ;;  %v720_v9 = vld [vmem:[#allocation4 + $0x30] sm:$0xff] }
 0x12b   :  { %v557_v8 = vmul.f32 %v556_v18, %v479_v17  ;;  %vm568_vm7 = vcmp.eq.f32.partialorder %v1712_v49, 8.507059e+37  ;;  %vm583_vm5 = vcmp.eq.f32.partialorder %v1714_v20, 8.507059e+37  ;;  %v604_v4 = vmul.f32 %v715_v53, %v512_v43 }
 0x12c   :  { %v571_v42 = vsel %vm568_vm7, %v1715_v28, %v566_v31  ;;  %v586_v34 = vsel %vm583_vm5, %v1716_v19, %v581_v47  ;;  %vm598_vm9 = vcmp.eq.f32.partialorder %v1718_v3, 8.507059e+37  ;;  %v605_v10 = vmul.f32 %v716_v0, %v527_v46  ;;  %611 = vst [vmem:[#allocation7] sm:$0xff] %v603_v57 }
 0x12d   :  { %v572_v17 = vmul.f32 %v571_v42, %v480_v52  ;;  %v587_v11 = vmul.f32 %v586_v34, %v481_v62  ;;  %v601_v61 = vsel %vm598_vm9, %v1719_v15, %v596_v27  ;;  %v606_v37 = vmul.f32 %v717_v14, %v542_v60  ;;  %612 = vst [vmem:[#allocation7 + $0x8] sm:$0xff] %v604_v4 }
 0x12e   :  { %v602_v13 = vmul.f32 %v601_v61, %v482_v50  ;;  %v607_v24 = vmul.f32 %v718_v5, %v557_v8  ;;  %613 = vst [vmem:[#allocation7 + $0x10] sm:$0xff] %v605_v10 }
 0x12f   :  { %v608_v58 = vmul.f32 %v719_v38, %v572_v17  ;;  %v609_v56 = vmul.f32 %v720_v9, %v587_v11  ;;  %614 = vst [vmem:[#allocation7 + $0x18] sm:$0xff] %v606_v37 }
 0x130   :  { %v610_v41 = vmul.f32 %v721_v54, %v602_v13  ;;  %615 = vst [vmem:[#allocation7 + $0x20] sm:$0xff] %v607_v24 }
 0x131   :  { %616 = vst [vmem:[#allocation7 + $0x28] sm:$0xff] %v608_v58 }
 0x132   :  { %617 = vst [vmem:[#allocation7 + $0x30] sm:$0xff] %v609_v56 }
 0x133   :  { %618 = vst [vmem:[#allocation7 + $0x38] sm:$0xff] %v610_v41 }
 0x134   :  { %631 = dma.vmem_to_hbm [thread:$0]  %s624_s17, 1024, %s626_s20, [#allocation6], %s775_s14, %s775_s14, %s776_s15  }
 0x135   :  { %772 = dma.done.wait [#allocation6], 1024  }
 0x136   :  { %773 = vsyncadd [#allocation6], 4294966272 }
 0x137   :  { %636 = vsyncpa [#allocation5], 1 }
 0x138   :  { %637 = vsyncpa [#allocation6], 1 }

</bundles_post_ra>
